<compile_context>
chip_gen: v7x
topology: tpu7x:2x2x1
jax: 0.10.0
libtpu: 0.0.40
codegen_flags: <defaults>
</compile_context>

<pallas_src>
import functools

import jax
import jax.numpy as jnp
from jax.experimental import pallas as pl
from jax.experimental.pallas import tpu as pltpu


def _round_up(x, m):
    return ((x + m - 1) // m) * m


def _cdiv(a, b):
    return (a + b - 1) // b


def _mlp_kernel(*refs, num_layers):
    """refs = (x_ref, w_0, b_0, ..., w_{L-1}, b_{L-1}, o_ref).

    x_ref:  (TM, K0)    activation tile (K0 may be unpadded; full-dim block)
    w_i:    (Ki, Ni)    bf16 weights (Ni padded to 128; Ki padded for i>0)
    b_i:    (1,  Ni)    f32 bias
    o_ref:  (TM, NL)    f32 output tile (NL padded to 128 -> lane-dense store)
    The whole MLP is computed with the activation kept in vregs/VMEM; only
    the final result is stored.
    """
    x_ref = refs[0]
    o_ref = refs[-1]
    act = x_ref[...]
    for li in range(num_layers):
        w_ref = refs[1 + 2 * li]
        b_ref = refs[2 + 2 * li]
        y = jnp.dot(
            act.astype(jnp.bfloat16),
            w_ref[...],
            preferred_element_type=jnp.float32,
        )
        y = y + b_ref[...]
        if li < num_layers - 1:
            y = jnp.maximum(y, 0.0)
        act = y
    o_ref[...] = act.astype(o_ref.dtype)


def mlp_pallas(x2, weights, biases, *, tm=1024):
    """Fused MLP forward.

    x2:      (M, Kin) activations (f32 or bf16), streamed unpadded.
    weights: list of (Ki, Ni) bf16; Ni padded to 128 (Ki unpadded for layer 0).
    biases:  list of (1, Ni) f32.
    Returns (M, N_last_padded) f32; padded output columns are exactly zero.
    """
    num_layers = len(weights)
    M, Kin = x2.shape
    n_last_pad = weights[-1].shape[1]

    # ---- batch tile selection ------------------------------------------
    # Split M over at least two grid steps when possible so the "parallel"
    # axis can shard across v7x's two TensorCores, but never below 8 rows
    # (f32 sublane granule) and never above the tm cap.
    m8 = _round_up(max(M, 1), 8)
    half = _round_up(_cdiv(m8, 2), 8)
    tm_eff = max(8, min(tm, half))

    # ---- VMEM residency guard + explicit limit ---------------------------
    in_bytes = jnp.dtype(x2.dtype).itemsize
    w_bytes = sum(int(w.size) * jnp.dtype(w.dtype).itemsize for w in weights)
    b_bytes = sum(int(b.size) * jnp.dtype(b.dtype).itemsize for b in biases)
    widest = max(int(w.shape[1]) for w in weights)

    def _est(tm_):
        x_tile = 2 * tm_ * Kin * in_bytes          # double-buffered input
        o_tile = 2 * tm_ * n_last_pad * 4          # double-buffered output
        act = 2 * tm_ * widest * 4                 # in-flight f32 activation
        return x_tile + o_tile + act + 2 * (w_bytes + b_bytes)

    budget = 40 << 20  # conservative: fits v7x's 64 MiB physical VMEM
    while tm_eff > 8 and _est(tm_eff) > budget:
        tm_eff = max(8, _round_up(tm_eff // 2, 8))
    # TODO(synk): if the resident bf16 weights alone exceed ~half of v7x's
    # 64 MiB VMEM (huge hidden dims), fall back to a per-layer tiled path
    # (grid over K/N marked "arbitrary" with an f32 accumulator scratch).

    grid_m = _cdiv(M, tm_eff)
    vmem_limit = int(min(max(_est(tm_eff) * 1.3, 32 << 20), 100 << 20))

    # ---- specs -----------------------------------------------------------
    in_specs = [pl.BlockSpec((tm_eff, Kin), lambda i: (i, 0))]
    args = [x2]
    for w, b in zip(weights, biases):
        # Weights/biases are grid-resident (block index never changes).
        in_specs.append(pl.BlockSpec(w.shape, lambda i: (0, 0)))
        in_specs.append(pl.BlockSpec(b.shape, lambda i: (0, 0)))
        args.append(w)
        args.append(b)

    kernel = functools.partial(_mlp_kernel, num_layers=num_layers)
    return pl.pallas_call(
        kernel,
        out_shape=jax.ShapeDtypeStruct((M, n_last_pad), jnp.float32),
        grid=(grid_m,),
        in_specs=in_specs,
        out_specs=pl.BlockSpec((tm_eff, n_last_pad), lambda i: (i, 0)),
        compiler_params=pltpu.CompilerParams(
            dimension_semantics=("parallel",),
            vmem_limit_bytes=vmem_limit,
        ),
    )(*args)


class MLP:
    """JAX/Pallas mirror of the PyTorch MLP: num_layers Linear layers,
    ReLU after every layer except the last."""

    def __init__(self, input_dim, hidden_dim, output_dim, num_layers, key):
        self.num_layers = num_layers
        self.output_dim = output_dim
        h = [hidden_dim] * (num_layers - 1)
        dims_in = [input_dim] + h
        dims_out = h + [output_dim]

        self.weights = []  # bf16, stored as (in, out) == W.T
        self.biases = []   # f32,  (1, Npad)
        for li, (n, k) in enumerate(zip(dims_in, dims_out)):
            key, wkey, bkey = jax.random.split(key, 3)
            # Deterministic init mimicking nn.Linear's U(-1/sqrt(n), 1/sqrt(n)).
            bound = 1.0 / float(n) ** 0.5
            w = jax.random.uniform(
                wkey, (n, k), jnp.float32, minval=-bound, maxval=bound
            )
            b = jax.random.uniform(
                bkey, (k,), jnp.float32, minval=-bound, maxval=bound
            )
            # Layer 0 keeps its contraction dim UNPADDED so x streams without
            # a host-side pad copy; later layers' K is already a 128 multiple
            # because the previous layer's N was padded.
            n_p = n if li == 0 else _round_up(n, 128)
            k_p = _round_up(k, 128)
            w_p = jnp.zeros((n_p, k_p), jnp.float32).at[:n, :k].set(w)
            b_p = jnp.zeros((1, k_p), jnp.float32).at[0, :k].set(b)
            self.weights.append(w_p.astype(jnp.bfloat16))
            self.biases.append(b_p)

        weights, biases, out_dim = self.weights, self.biases, self.output_dim

        @jax.jit
        def _forward(x2):
            y = mlp_pallas(x2, weights, biases)
            return y[:, :out_dim]  # single slice of the padded output columns

        self._forward = _forward

    def __call__(self, x):
        # nn.Linear semantics: act on last dim, broadcast over leading dims.
        # No dtype cast here: the kernel accepts f32 or bf16 activations and
        # casts to bf16 in-register before each dot.
        lead = x.shape[:-1]
        x2 = x.reshape(-1, x.shape[-1])
        y = self._forward(x2)
        return y.reshape(*lead, self.output_dim)


if __name__ == "__main__":
    key = jax.random.PRNGKey(0)
    key, xkey, pkey = jax.random.split(key, 3)

    # Small shapes consistent with the module: DETR-style box head
    # MLP(input_dim=32, hidden_dim=32, output_dim=16, num_layers=3) applied to
    # a (batch=2, queries=8, 32) tensor.
    input_dim, hidden_dim, output_dim, num_layers = 32, 32, 16, 3
    x = jax.random.normal(xkey, (2, 8, input_dim), jnp.float32)

    mlp = MLP(input_dim, hidden_dim, output_dim, num_layers, pkey)
    y = mlp(x)
    y = jax.block_until_ready(y)

    # Pure-JAX reference replicating the exact (bf16-operand, f32-accumulate)
    # math the kernel performs.
    ref = x.reshape(-1, input_dim).astype(jnp.float32)
    for i, (w_bf16, b) in enumerate(zip(mlp.weights, mlp.biases)):
        a = ref.astype(jnp.bfloat16).astype(jnp.float32)
        ref = a @ w_bf16.astype(jnp.float32) + b
        if i < num_layers - 1:
            ref = jnp.maximum(ref, 0.0)
    ref = ref[:, :output_dim].reshape(2, 8, output_dim)

    assert y.shape == (2, 8, output_dim)
    assert jnp.allclose(y, ref, atol=2e-4, rtol=2e-4), (
        float(jnp.max(jnp.abs(y - ref)))
    )

    print("KERNEL_OK")
</pallas_src>

<mosaic_0001>
module attributes {stable_mosaic.version = 11 : i64} {
  func.func @_mlp_kernel(%arg0: i32, %arg1: memref<8x32xf32, #tpu.memory_space<vmem>>, %arg2: memref<32x128xbf16, #tpu.memory_space<vmem>>, %arg3: memref<1x128xf32, #tpu.memory_space<vmem>>, %arg4: memref<128x128xbf16, #tpu.memory_space<vmem>>, %arg5: memref<1x128xf32, #tpu.memory_space<vmem>>, %arg6: memref<128x128xbf16, #tpu.memory_space<vmem>>, %arg7: memref<1x128xf32, #tpu.memory_space<vmem>>, %arg8: memref<8x128xf32, #tpu.memory_space<vmem>>) attributes {dimension_semantics = [#tpu.dimension_semantics<parallel>], iteration_bounds = array<i64: 2>, scalar_prefetch = 0 : i64, scratch_operands = 0 : i64, tpu.core_type = #tpu.core_type<tc>, window_params = [{transform_indices = @transform_0, window_bounds = array<i64: 8, 32>}, {pipeline_mode = #tpu.pipeline_mode<synchronous>, transform_indices = @transform_1, window_bounds = array<i64: 32, 128>}, {pipeline_mode = #tpu.pipeline_mode<synchronous>, transform_indices = @transform_2, window_bounds = array<i64: 1, 128>}, {pipeline_mode = #tpu.pipeline_mode<synchronous>, transform_indices = @transform_3, window_bounds = array<i64: 128, 128>}, {pipeline_mode = #tpu.pipeline_mode<synchronous>, transform_indices = @transform_4, window_bounds = array<i64: 1, 128>}, {pipeline_mode = #tpu.pipeline_mode<synchronous>, transform_indices = @transform_5, window_bounds = array<i64: 128, 128>}, {pipeline_mode = #tpu.pipeline_mode<synchronous>, transform_indices = @transform_6, window_bounds = array<i64: 1, 128>}, {transform_indices = @transform_7, window_bounds = array<i64: 8, 128>}]} {
    %c0 = arith.constant 0 : index
    %c0_0 = arith.constant 0 : index
    %0 = vector.load %arg1[%c0, %c0_0] : memref<8x32xf32, #tpu.memory_space<vmem>>, vector<8x32xf32>
    %1 = arith.truncf %0 : vector<8x32xf32> to vector<8x32xbf16>
    %c0_1 = arith.constant 0 : index
    %c0_2 = arith.constant 0 : index
    %2 = vector.load %arg2[%c0_1, %c0_2] : memref<32x128xbf16, #tpu.memory_space<vmem>>, vector<32x128xbf16>
    %cst = arith.constant dense<0.000000e+00> : vector<8x128xf32>
    %3 = tpu.matmul %1, %2, %cst {dimension_numbers = #tpu.dot_dimension_numbers<[1], [0], [0], [1], [0, 0, 1, 1], [], []>} : vector<8x32xbf16>, vector<32x128xbf16>, vector<8x128xf32> -> vector<8x128xf32>
    %c0_3 = arith.constant 0 : index
    %c0_4 = arith.constant 0 : index
    %4 = vector.load %arg3[%c0_3, %c0_4] : memref<1x128xf32, #tpu.memory_space<vmem>>, vector<1x128xf32>
    %5 = vector.broadcast %4 : vector<1x128xf32> to vector<8x128xf32>
    %6 = arith.addf %3, %5 : vector<8x128xf32>
    %cst_5 = arith.constant 0.000000e+00 : f32
    %7 = vector.broadcast %cst_5 : f32 to vector<8x128xf32>
    %8 = arith.maximumf %6, %7 : vector<8x128xf32>
    %9 = arith.truncf %8 : vector<8x128xf32> to vector<8x128xbf16>
    %c0_6 = arith.constant 0 : index
    %c0_7 = arith.constant 0 : index
    %10 = vector.load %arg4[%c0_6, %c0_7] : memref<128x128xbf16, #tpu.memory_space<vmem>>, vector<128x128xbf16>
    %cst_8 = arith.constant dense<0.000000e+00> : vector<8x128xf32>
    %11 = tpu.matmul %9, %10, %cst_8 {dimension_numbers = #tpu.dot_dimension_numbers<[1], [0], [0], [1], [0, 0, 1, 1], [], []>} : vector<8x128xbf16>, vector<128x128xbf16>, vector<8x128xf32> -> vector<8x128xf32>
    %c0_9 = arith.constant 0 : index
    %c0_10 = arith.constant 0 : index
    %12 = vector.load %arg5[%c0_9, %c0_10] : memref<1x128xf32, #tpu.memory_space<vmem>>, vector<1x128xf32>
    %13 = vector.broadcast %12 : vector<1x128xf32> to vector<8x128xf32>
    %14 = arith.addf %11, %13 : vector<8x128xf32>
    %cst_11 = arith.constant 0.000000e+00 : f32
    %15 = vector.broadcast %cst_11 : f32 to vector<8x128xf32>
    %16 = arith.maximumf %14, %15 : vector<8x128xf32>
    %17 = arith.truncf %16 : vector<8x128xf32> to vector<8x128xbf16>
    %c0_12 = arith.constant 0 : index
    %c0_13 = arith.constant 0 : index
    %18 = vector.load %arg6[%c0_12, %c0_13] : memref<128x128xbf16, #tpu.memory_space<vmem>>, vector<128x128xbf16>
    %cst_14 = arith.constant dense<0.000000e+00> : vector<8x128xf32>
    %19 = tpu.matmul %17, %18, %cst_14 {dimension_numbers = #tpu.dot_dimension_numbers<[1], [0], [0], [1], [0, 0, 1, 1], [], []>} : vector<8x128xbf16>, vector<128x128xbf16>, vector<8x128xf32> -> vector<8x128xf32>
    %c0_15 = arith.constant 0 : index
    %c0_16 = arith.constant 0 : index
    %20 = vector.load %arg7[%c0_15, %c0_16] : memref<1x128xf32, #tpu.memory_space<vmem>>, vector<1x128xf32>
    %21 = vector.broadcast %20 : vector<1x128xf32> to vector<8x128xf32>
    %22 = arith.addf %19, %21 : vector<8x128xf32>
    %c0_17 = arith.constant 0 : index
    %c0_18 = arith.constant 0 : index
    %23 = vector.load %arg8[%c0_17, %c0_18] : memref<8x128xf32, #tpu.memory_space<vmem>>, vector<8x128xf32>
    tpu.vector_store %arg8[%c0_17, %c0_18], %22 {strides = array<i32>} : memref<8x128xf32, #tpu.memory_space<vmem>>, vector<8x128xf32>,
    return
  }
  func.func @transform_0(%arg0: i32) -> (i32, i32) {
    %c0_i32 = arith.constant 0 : i32
    %c0_i32_0 = arith.constant 0 : i32
    return %arg0, %c0_i32 : i32, i32
  }
  func.func @transform_1(%arg0: i32) -> (i32, i32) {
    %c0_i32 = arith.constant 0 : i32
    %c0_i32_0 = arith.constant 0 : i32
    %c0_i32_1 = arith.constant 0 : i32
    return %c0_i32, %c0_i32_0 : i32, i32
  }
  func.func @transform_2(%arg0: i32) -> (i32, i32) {
    %c0_i32 = arith.constant 0 : i32
    %c0_i32_0 = arith.constant 0 : i32
    %c0_i32_1 = arith.constant 0 : i32
    return %c0_i32, %c0_i32_0 : i32, i32
  }
  func.func @transform_3(%arg0: i32) -> (i32, i32) {
    %c0_i32 = arith.constant 0 : i32
    %c0_i32_0 = arith.constant 0 : i32
    %c0_i32_1 = arith.constant 0 : i32
    return %c0_i32, %c0_i32_0 : i32, i32
  }
  func.func @transform_4(%arg0: i32) -> (i32, i32) {
    %c0_i32 = arith.constant 0 : i32
    %c0_i32_0 = arith.constant 0 : i32
    %c0_i32_1 = arith.constant 0 : i32
    return %c0_i32, %c0_i32_0 : i32, i32
  }
  func.func @transform_5(%arg0: i32) -> (i32, i32) {
    %c0_i32 = arith.constant 0 : i32
    %c0_i32_0 = arith.constant 0 : i32
    %c0_i32_1 = arith.constant 0 : i32
    return %c0_i32, %c0_i32_0 : i32, i32
  }
  func.func @transform_6(%arg0: i32) -> (i32, i32) {
    %c0_i32 = arith.constant 0 : i32
    %c0_i32_0 = arith.constant 0 : i32
    %c0_i32_1 = arith.constant 0 : i32
    return %c0_i32, %c0_i32_0 : i32, i32
  }
  func.func @transform_7(%arg0: i32) -> (i32, i32) {
    %c0_i32 = arith.constant 0 : i32
    %c0_i32_0 = arith.constant 0 : i32
    return %arg0, %c0_i32 : i32, i32
  }
}

</mosaic_0001>

<bundles_post_ra>
// kernel: _forward.1
= control target key start
LH: loop header
LB: loop body
LE: loop exit
PB: predicated region body
PF: predicated region fallthrough
CT: control target
= control target key end

     0   :  { %12 = vsyncpa [#allocation3], 0  ;;  %s1397_s0 = inlined_call_operand.hbm [shape: f32[16,32], index: 0, kind: input, shape index: {}]   ;;  %s1398_s1 = inlined_call_operand.vmem [shape: bf16[32,128], index: 1, kind: input, shape index: {}]   ;;  %s1399_s2 = inlined_call_operand.vmem [shape: f32[1,128], index: 2, kind: input, shape index: {}]   ;;  %s1400_s3 = inlined_call_operand.hbm [shape: bf16[128,128], index: 3, kind: input, shape index: {}]   ;;  %s1401_s4 = inlined_call_operand.vmem [shape: f32[1,128], index: 4, kind: input, shape index: {}]   ;;  %s1402_s5 = inlined_call_operand.hbm [shape: bf16[128,128], index: 5, kind: input, shape index: {}]   ;;  %s1403_s6 = inlined_call_operand.vmem [shape: f32[1,128], index: 6, kind: input, shape index: {}]   ;;  %s1404_s7 = inlined_call_operand.hbm [shape: f32[16,128], index: 7, kind: output, shape index: {}]  }
   0x1   :  { %14 = vsyncpa [#allocation3 + $0x1], 0 }
   0x2   :  { %15 = vsyncpa [#allocation6], 0 }
   0x3   :  { %16 = vsyncpa [#allocation4], 0 }
   0x4   :  { %18 = vsyncpa [#allocation4 + $0x1], 0  ;;  %s1125_s24 = smov 0   ;;  %s1127_s25 = smov 0  }
   0x5   :  { %s1129_s26 = smov 0   ;;  %s1131_s27 = smov 0  }
   0x6 LB: > { %s1146_s28 = sadd.s32 4294967295, %s1075_s27   ;;  %s723_s29 = sadd.s32 4294967294, %s1075_s27   ;;  %s1075_s27 = sphi %s1131_s27, %s1424_s27   ;;  %s1071_s26 = sphi %s1129_s26, %s1423_s26   ;;  %s1067_s25 = sphi %s1127_s25, %s1422_s25   ;;  %s1063_s24 = sphi %s1125_s24, %s1421_s24  }
   0x7   : > { %p44_p0 = scmp.ne.s32.totalorder %s1067_s25, %s1063_s24  ;;  %p1405_p1 = scmp.eq.s32.totalorder %s1146_s28, 0 }
   0x8   : > { %p200_p3 = scmp.eq.s32.totalorder %s723_s29, 1  ;;  %p724_p5 = scmp.ge.s32.totalorder %s1075_s27, 1 }
   0x9   : > { %p1155_p4 = por %p1405_p1, %p44_p0  ;;  %p207_p7 = scmp.lt.s32.totalorder %s1075_s27, 3 }
   0xa   : > { %p1160_p6 = por %p200_p3, %p44_p0  ;;  %s1077_s10 = smov [#allocation5]  }
   0xb   : > { %s1408_s30 = scalar_select %p1155_p4, 1, 0 }
   0xc   : > { %s1409_s8 = scalar_select %p1160_p6, 1, 0 }
   0xd   : > { %p1165_p8 = pnand %p724_p5, %p207_p7  ;;  %s225_s11 = sshll.u32 %s1077_s10, 4  ;;  %s1169_s11 = int_to_ptr.vmem [resolvable:$true] %s225_s11 }
   0xe   : > { %s1078_s13 = smov [#allocation7]   ;;  %s919_s17 = scalar_lea.hbm %s1400_s3, 1024 }
   0xf   : > { %p842_p9 = pneg %p1165_p8  ;;  %s241_s14 = sshll.u32 %s1078_s13, 4  ;;  %s1180_s14 = int_to_ptr.vmem [resolvable:$true] %s241_s14 }
  0x10   : > { %p920_p12 = scmp.ne.s32.totalorder %s1400_s3, %s919_s17  ;;  %p926_p5 = scmp.lt.u32.totalorder %s919_s17, %s1400_s3 }
  0x11   : > { %p1176_p11 = pnand %p842_p9, %p1405_p1 }
  0x13   : > { %p921_p13 = pneg %p1176_p11 }
  0x15   : > { %p922_p0 = pnand %p921_p13, %p920_p12 }
  0x17   : > { %p923_p3 = pneg %p922_p0 }
  0x19   : > { %p928_p7 = pnand %p926_p5, %p923_p3 }
  0x1b   : > { %931 = shalt.err (!%p928_p7)
}
  0x1c   : > { %s932_s22 = scalar_lea.vmem %s1169_s11, 1024  ;;  %p940_p2 = scmp.lt.s32.totalorder %s1169_s11, %s1169_s11 }
  0x1d   : > { %p933_p9 = scmp.ne.s32.totalorder %s1169_s11, %s932_s22  ;;  %p941_p12 = scmp.lt.s32.totalorder %s932_s22, %s932_s22 }
  0x1f   : > { %p935_p10 = pnand %p933_p9, %p921_p13  ;;  %p942_p0 = por %p941_p12, %p940_p2 }
  0x21   : > { %p936_p1 = pneg %p935_p10 }
  0x23   : > { %p943_p6 = pnand %p942_p0, %p936_p1 }
  0x25   : > { %946 = shalt.err (!%p943_p6)
}
  0x26   : > { %s1079_s23 = smov 64   ;;  %s1080_s29 = smov 4  }
  0x27   : > { %845 = dma.hbm_to_vmem [thread:$0]  (!%p1176_p11), %s1400_s3, 1024, %s1169_s11, [#allocation6], %s1079_s23, %s1079_s23, %s1080_s29  }
  0x28   : > { %s947_s17 = scalar_lea.hbm %s1402_s5, 1024 }
  0x29   : > { %p948_p2 = scmp.ne.s32.totalorder %s1402_s5, %s947_s17  ;;  %p954_p10 = scmp.lt.u32.totalorder %s947_s17, %s1402_s5 }
  0x2b   : > { %p950_p1 = pnand %p948_p2, %p921_p13 }
  0x2d   : > { %p951_p6 = pneg %p950_p1 }
  0x2f   : > { %p956_p3 = pnand %p954_p10, %p951_p6 }
  0x31   : > { %959 = shalt.err (!%p956_p3)
}
  0x32   : > { %s960_s11 = scalar_lea.vmem %s1180_s14, 1024  ;;  %p968_p12 = scmp.lt.s32.totalorder %s1180_s14, %s1180_s14 }
  0x33   : > { %p961_p5 = scmp.ne.s32.totalorder %s1180_s14, %s960_s11  ;;  %p969_p0 = scmp.lt.s32.totalorder %s960_s11, %s960_s11 }
  0x35   : > { %p963_p7 = pnand %p961_p5, %p921_p13  ;;  %p970_p2 = por %p969_p0, %p968_p12 }
  0x37   : > { %p964_p9 = pneg %p963_p7 }
  0x39   : > { %p971_p1 = pnand %p970_p2, %p964_p9 }
  0x3b   : > { %974 = shalt.err (!%p971_p1)
}
  0x3c   : > { %848 = dma.hbm_to_vmem [thread:$0]  (!%p1176_p11), %s1402_s5, 1024, %s1180_s14, [#allocation6], %s1079_s23, %s1079_s23, %s1080_s29  }
  0x3d   : > { %s1235_s13 = sadd.s32 1, %s1075_s27   ;;  %s31_s12 = sadd.s32 1, %s1071_s26 }
  0x3e   : > { %s28_s15 = ssub.s32 %s1075_s27, %s1235_s13  ;;  %p38_p13 = scmp.ne.s32.totalorder %s1071_s26, %s1067_s25 }
  0x3f   : > { %p29_p6 = scmp.eq.s32.totalorder %s28_s15, 0  ;;  %p39_p10 = scmp.eq.s32.totalorder %s1075_s27, 0 }
  0x40   : > { %p1412_p3 = scmp.eq.s32.totalorder %s1146_s28, 1  ;;  %p859_p7 = scmp.lt.s32.totalorder %s1075_s27, 2 }
  0x41   : > { %s1251_s17 = scalar_select %p29_p6, %s1071_s26, %s31_s12  }
  0x42   : > { %p1245_p5 = por %p1412_p3, %p38_p13  ;;  %p40_p9 = por %p39_p10, %p38_p13 }
  0x43   : > { %s258_s18 = sand.u32 1, %s1071_s26   ;;  %s729_s14 = sshll.u32 %s1075_s27, 7 }
  0x44   : > { %s1413_s16 = scalar_select %p1245_p5, 1, 0 }
  0x45   : > { %s728_s19 = sshll.u32 %s258_s18, 3  ;;  %s1258_s20 = scalar_lea.hbm %s1397_s0, %s729_s14 }
  0x46   : > { %s262_s21 = scalar_lea.vmem [#allocation2], %s728_s19  ;;  %p1262_p11 = pnand %p859_p7, %p40_p9 }
  0x47   : > { %s269_s11 = sshll.u32 %s262_s21, 4  ;;  %s259_s10 = scalar_lea.sflag [#allocation3], %s258_s18  ;;  %s1260_s11 = int_to_ptr.vmem [resolvable:$true] %s269_s11 }
  0x48   : > { %s975_s12 = scalar_lea.hbm %s1258_s20, 128  ;;  %p977_p0 = pneg %p1262_p11 }
  0x49   : > { %p976_p12 = scmp.ne.s32.totalorder %s1258_s20, %s975_s12  ;;  %s980_s14 = scalar_lea.hbm %s1397_s0, 256 }
  0x4a   : > { %p981_p13 = scmp.lt.u32.totalorder %s1258_s20, %s1397_s0  ;;  %p982_p6 = scmp.lt.u32.totalorder %s980_s14, %s975_s12 }
  0x4b   : > { %p978_p2 = pnand %p977_p0, %p976_p12  ;;  %p984_p3 = scmp.lt.u32.totalorder %s975_s12, %s1258_s20 }
  0x4c   : > { %p983_p10 = por %p982_p6, %p981_p13 }
  0x4d   : > { %p979_p1 = pneg %p978_p2 }
  0x4e   : > { %p985_p7 = por %p984_p3, %p983_p10 }
  0x50   : > { %p986_p9 = pnand %p985_p7, %p979_p1 }
  0x52   : > { %989 = shalt.err (!%p986_p9)
}
  0x53   : > { %s990_s18 = scalar_lea.vmem %s1260_s11, 128  ;;  %s1081_s21 = smov [#allocation2]  }
  0x54   : > { %p991_p12 = scmp.ne.s32.totalorder %s1260_s11, %s990_s18  ;;  %s995_s15 = sshll.u32 %s1081_s21, 4  ;;  %s996_s15 = int_to_ptr.vmem [resolvable:$false] %s995_s15 }
  0x55   : > { %s997_s19 = scalar_lea.vmem %s996_s15, 256  ;;  %p998_p4 = scmp.lt.s32.totalorder %s1260_s11, %s996_s15 }
  0x56   : > { %p993_p2 = pnand %p991_p12, %p977_p0  ;;  %p999_p13 = scmp.lt.s32.totalorder %s997_s19, %s990_s18 }
  0x58   : > { %p994_p5 = pneg %p993_p2  ;;  %p1000_p6 = por %p999_p13, %p998_p4 }
  0x5a   : > { %p1001_p10 = pnand %p1000_p6, %p994_p5 }
  0x5c   : > { %1004 = shalt.err (!%p1001_p10)
}
  0x5d   : > { %852 = dma.hbm_to_vmem [thread:$0]  (!%p1262_p11), %s1258_s20, 128, %s1260_s11, %s259_s10  }
  0x5e   : > { %278 = sbr.rel (%p1165_p8) target bundleno = 779 (0x30b), region = 48  ;;  %s1294_s12 = sand.u32 (!%p1165_p8), 1, %s1067_s25  }
  0x5f   : > { %s731_s14 = sshll.u32 (!%p1165_p8), %s1294_s12, 3  ;;  %s281_s23 = scalar_lea.sflag (!%p1165_p8), [#allocation3], %s1294_s12 }
  0x60   : > { %s284_s29 = scalar_lea.vmem (!%p1165_p8), [#allocation2], %s731_s14  ;;  %p1415_p4 = scmp.ne.s32.totalorder (!%p1165_p8), %s1408_s30, 0 }
  0x65   : > { %1050 = dma.done.wait (%p1415_p4), %s281_s23, 128  }
  0x66   : > { %1052 = vsyncadd (%p1415_p4), %s281_s23, 4294967168  ;;  %p1416_p5 = scmp.eq.s32.totalorder %s1146_s28, 0 }
  0x68   : > { %1054 = dma.done.wait (%p1416_p5), [#allocation6], 2048   ;;  %p1417_p8 = pmov %p1416_p5 }
  0x69   : > { %v1082_v0 = vmov 0.0   ;;  %vm1083_vm0 = vmmov 0   ;;  %v901_v1 = vld [vmem:[%s1398_s1] sm:$0xff]   ;;  %v902_v2 = vld [vmem:[%s1398_s1 + $0x8] sm:$0xff]   ;;  %v903_v4 = vld [vmem:[#allocation5] sm:$0xff]   ;;  %vm349_vm1 = vcmask 261120  }
  0x6a   : > { %1056 = vsyncadd (%p1417_p8), [#allocation6], 4294965248  ;;  %782 = vmatprep.subr.bf16.mxu0 %v1082_v0  ;;  %786 = vmatprep.mubr.msk.bf16.mxu0 %vm1083_vm0, %v1082_v0  ;;  %v324_v3 = vld [vmem:[%s284_s29] sm:$0xff]  ;;  %v904_v6 = vld [vmem:[#allocation5 + $0x8] sm:$0xff]   ;;  %s758_s23 = sshll.u32 %s1146_s28, 7  ;;  %s322_s29 = scalar_lea.vmem [#allocation8], %s731_s14 }
  0x6b   : > { %790 = vmatprep.subr.bf16.mxu1 %v1082_v0  ;;  %806 = vmatprep.mubr.msk.bf16.mxu1 %vm1083_vm0, %v1082_v0  ;;  %v325_v5 = vpack.c.bf16 %v324_v3, %v324_v3  ;;  %v905_v7 = vld [vmem:[#allocation5 + $0x10] sm:$0xff]   ;;  %v906_v8 = vld [vmem:[#allocation5 + $0x18] sm:$0xff]   ;;  %v907_v9 = vld [vmem:[#allocation5 + $0x20] sm:$0xff]   ;;  %s634_s30 = sshll.u32 %s322_s29, 4  ;;  %s1353_s11 = scalar_lea.hbm %s1404_s7, %s758_s23  ;;  %s1355_s30 = int_to_ptr.vmem [resolvable:$true] %s634_s30 }
  0x6c   : > { %783 = vmatpush3.bf16.msra.mxu0 %v901_v1  ;;  %791 = vmatpush3.bf16.msra.mxu1 %v903_v4  ;;  %v908_v10 = vld [vmem:[#allocation5 + $0x28] sm:$0xff]   ;;  %v909_v11 = vld [vmem:[#allocation5 + $0x30] sm:$0xff]   ;;  %v910_v12 = vld [vmem:[#allocation5 + $0x38] sm:$0xff]   ;;  %s621_s28 = scalar_lea.sflag [#allocation4], %s1294_s12  ;;  %s1005_s22 = scalar_lea.vmem %s1355_s30, 128 }
  0x6d   : > { %784 = vmatprep.subr.bf16.mxu0 %v1082_v0  ;;  %792 = vmatprep.subr.bf16.mxu1 %v1082_v0  ;;  %v911_v13 = vld [vmem:[#allocation7] sm:$0xff]   ;;  %v912_v14 = vld [vmem:[#allocation7 + $0x8] sm:$0xff]   ;;  %v913_v15 = vld [vmem:[#allocation7 + $0x10] sm:$0xff]   ;;  %p1006_p11 = scmp.ne.s32.totalorder %s1355_s30, %s1005_s22  ;;  %p1418_p0 = scmp.ne.s32.totalorder %s1413_s16, 0 }
  0x6e   : > { %v914_v16 = vld [vmem:[#allocation7 + $0x18] sm:$0xff]   ;;  %v915_v17 = vld [vmem:[#allocation7 + $0x20] sm:$0xff]   ;;  %v916_v18 = vld [vmem:[#allocation7 + $0x28] sm:$0xff]   ;;  %s1084_s14 = smov [#allocation8]  }
  0x6f   : > { %v735_v19 = vld [vmem:[%s1399_s2] ss:$0 sm:$0xff]  ;;  %v918_v28 = vld [vmem:[#allocation7 + $0x38] sm:$0xff]   ;;  %p1007_p1 = pnand %p1006_p11, %p1418_p0  ;;  %s1009_s10 = sshll.u32 %s1084_s14, 4  ;;  %s1010_s10 = int_to_ptr.vmem [resolvable:$false] %s1009_s10 }
  0x70   : > { %785 = vmatpush3.bf16.msra.mxu0 %v902_v2  ;;  %793 = vmatpush3.bf16.msra.mxu1 %v904_v6  ;;  %v917_v27 = vld [vmem:[#allocation7 + $0x30] sm:$0xff]   ;;  %s1011_s18 = scalar_lea.vmem %s1010_s10, 256  ;;  %p1012_p7 = scmp.lt.s32.totalorder %s1355_s30, %s1010_s10 }
  0x71   : > { %810 = vmatprep.subr.bf16.mxu0 %v1082_v0  ;;  %794 = vmatprep.subr.bf16.mxu1 %v1082_v0  ;;  %v739_v29 = vld [vmem:[%s1401_s4] ss:$0 sm:$0xff]  ;;  %p1008_p3 = pneg %p1007_p1  ;;  %p1013_p9 = scmp.lt.s32.totalorder %s1011_s18, %s1005_s22 }
  0x72   : > { %v748_v37 = vld [vmem:[%s1403_s6] ss:$0 sm:$0xff] }
  0x73   : > { %787 = vmatmul.mubr.msk.bf16.vlgmr.msra.gmra.mrb[0].mxu0 %vm349_vm1, %v325_v5  ;;  %p1014_p12 = por %p1013_p9, %p1012_p7 }
  0x74   : > { %826 = vmatprep.mubr.msk.bf16.mxu0 %vm1083_vm0, %v1082_v0  ;;  %795 = vmatpush3.bf16.msra.mxu1 %v905_v7 }
  0x75   : > { %796 = vmatprep.subr.bf16.mxu1 %v1082_v0  ;;  %811 = vmatpush3.bf16.msra.mxu0 %v911_v13  ;;  %p1015_p2 = pnand %p1014_p12, %p1008_p3 }
  0x76   : > { %812 = vmatprep.subr.bf16.mxu0 %v1082_v0 }
  0x78   : > { %797 = vmatpush3.bf16.msra.mxu1 %v906_v8 }
  0x79   : > { %798 = vmatprep.subr.bf16.mxu1 %v1082_v0  ;;  %813 = vmatpush3.bf16.msra.mxu0 %v912_v14 }
  0x7a   : > { %814 = vmatprep.subr.bf16.mxu0 %v1082_v0 }
  0x7c   : > { %799 = vmatpush3.bf16.msra.mxu1 %v907_v9 }
  0x7d   : > { %800 = vmatprep.subr.bf16.mxu1 %v1082_v0  ;;  %815 = vmatpush3.bf16.msra.mxu0 %v913_v15 }
  0x7e   : > { %816 = vmatprep.subr.bf16.mxu0 %v1082_v0 }
  0x80   : > { %801 = vmatpush3.bf16.msra.mxu1 %v908_v10 }
  0x81   : > { %802 = vmatprep.subr.bf16.mxu1 %v1082_v0  ;;  %817 = vmatpush3.bf16.msra.mxu0 %v914_v16 }
  0x82   : > { %818 = vmatprep.subr.bf16.mxu0 %v1082_v0 }
  0x84   : > { %803 = vmatpush3.bf16.msra.mxu1 %v909_v11 }
  0x85   : > { %804 = vmatprep.subr.bf16.mxu1 %v1082_v0  ;;  %819 = vmatpush3.bf16.msra.mxu0 %v915_v17 }
  0x86   : > { %820 = vmatprep.subr.bf16.mxu0 %v1082_v0 }
  0x88   : > { %805 = vmatpush3.bf16.msra.mxu1 %v910_v12 }
  0x89   : > { %821 = vmatpush3.bf16.msra.mxu0 %v916_v18 }
  0x8a   : > { %822 = vmatprep.subr.bf16.mxu0 %v1082_v0 }
  0x8d   : > { %823 = vmatpush3.bf16.msra.mxu0 %v917_v27 }
  0x8e   : > { %824 = vmatprep.subr.bf16.mxu0 %v1082_v0 }
  0x91   : > { %825 = vmatpush3.bf16.msra.mxu0 %v918_v28 }
 0x146   : > { %v387_v20 = vpop.f32.mrb[0].mxu0 }
 0x147   : > { %v388_v21 = vadd.f32 %v735_v19, %v387_v20  ;;  %v788_v22 = vpop.f32.mrb[1].mxu0 }
 0x148   : > { %v390_v23 = vpop.f32.mrb[2].mxu0 }
 0x149   : > { %v393_v24 = vmax.f32 %v388_v21, 0.0  ;;  %v789_v25 = vpop.f32.mrb[3].mxu0 }
 0x14b   : > { %v394_v26 = vpack.c.bf16 %v393_v24, %v393_v24 }
 0x14d   : > { %807 = vmatmul.mubr.bf16.vlgmr.msra.gmra.mrb[0].mxu1 %v394_v26 }
 0x220   : > { %v500_v30 = vpop.f32.mrb[0].mxu1 }
 0x221   : > { %v501_v31 = vadd.f32 %v739_v29, %v500_v30  ;;  %v808_v32 = vpop.f32.mrb[1].mxu1 }
 0x222   : > { %v503_v33 = vpop.f32.mrb[2].mxu1 }
 0x223   : > { %v506_v34 = vmax.f32 %v501_v31, 0.0  ;;  %v809_v35 = vpop.f32.mrb[3].mxu1 }
 0x225   : > { %v507_v36 = vpack.c.bf16 %v506_v34, %v506_v34 }
 0x227   : > { %827 = vmatmul.mubr.bf16.vlgmr.msra.gmra.mrb[4].mxu0 %v507_v36 }
 0x2fa   : > { %v613_v38 = vpop.f32.mrb[4].mxu0 }
 0x2fb   : > { %v614_v39 = vadd.f32 %v748_v37, %v613_v38  ;;  %v828_v40 = vpop.f32.mrb[5].mxu0 }
 0x2fc   : > { %v616_v41 = vpop.f32.mrb[6].mxu0 }
 0x2fd   : > { %619 = vst [vmem:[%s322_s29] sm:$0xff] %v614_v39  ;;  %v829_v42 = vpop.f32.mrb[7].mxu0 }
 0x2fe   : > { %1018 = shalt.err (!%p1015_p2)
}
 0x2ff   : > { %s1019_s12 = scalar_lea.hbm %s1353_s11, 128  ;;  %s1023_s19 = scalar_lea.hbm %s1404_s7, 256 }
 0x300   : > { %p1020_p13 = scmp.ne.s32.totalorder %s1353_s11, %s1019_s12  ;;  %p1024_p4 = scmp.lt.u32.totalorder %s1353_s11, %s1404_s7 }
 0x301   : > { %p1025_p5 = scmp.lt.u32.totalorder %s1023_s19, %s1019_s12  ;;  %p1027_p11 = scmp.lt.u32.totalorder %s1019_s12, %s1353_s11 }
 0x302   : > { %p1021_p6 = pnand %p1020_p13, %p1418_p0 }
 0x303   : > { %p1026_p8 = por %p1025_p5, %p1024_p4 }
 0x304   : > { %p1022_p10 = pneg %p1021_p6 }
 0x305   : > { %p1028_p1 = por %p1027_p11, %p1026_p8 }
 0x307   : > { %p1029_p3 = pnand %p1028_p1, %p1022_p10 }
 0x309   : > { %1032 = shalt.err (!%p1029_p3)
}
 0x30a   : > { %840 = dma.vmem_to_hbm [thread:$0]  (%p1418_p0), %s1355_s30, 128, %s1353_s11, %s621_s28  }
 0x30b PF: > { %s646_s9 = sand.u32 1, %s1063_s24   ;;  %p1419_p7 = scmp.ne.s32.totalorder %s1409_s8, 0 }
 0x30c   : > { %p1420_p9 = scmp.ge.s32.totalorder %s1075_s27, 2  ;;  %s647_s20 = scalar_lea.sflag [#allocation4], %s646_s9 }
 0x30e   : > { %p854_p12 = pnand %p1420_p9, %p1419_p7 }
 0x310   : > { %1058 = dma.done.wait (!%p854_p12), %s647_s20, 128  }
 0x311   : > { %1060 = vsyncadd (!%p854_p12), %s647_s20, 4294967168  ;;  %p21_p2 = scmp.ge.s32.totalorder %s1235_s13, 4   ;;  %s1421_s24 = smov %s1067_s25 }
 0x312   : > { %s1422_s25 = smov %s1071_s26  ;;  %s1423_s26 = smov %s1251_s17 }
 0x313   : > { %s1424_s27 = smov %s1235_s13  ;;  %23 = sbr.rel (!%p21_p2) target bundleno = 6 (0x6), region = 101 }
 0x31a   :  { %652 = vsyncpa [#allocation3], 1 }
 0x31b   :  { %654 = vsyncpa [#allocation3 + $0x1], 1 }
 0x31c   :  { %655 = vsyncpa [#allocation6], 1 }
 0x31d   :  { %656 = vsyncpa [#allocation4], 1 }
 0x31e   :  { %658 = vsyncpa [#allocation4 + $0x1], 1 }

</bundles_post_ra>
